<compile_context>
chip_gen: v6e
topology: v6e:2x2x1
jax: 0.10.0
libtpu: 0.0.40
codegen_flags: <defaults>
</compile_context>

<pallas_src>
import functools

import jax
import jax.numpy as jnp
from jax import lax
from jax.experimental import pallas as pl
from jax.experimental.pallas import tpu as pltpu

OUT_ROWS = 8  # sublane-aligned padded row count for the transposed output (true out dim = 2)


def _mlp_kernel(x_ref, w1_ref, b1_ref, w2_ref, b2_ref, w3t_ref, b3t_ref, o_ref):
    # bf16 matmul operands (full-rate MXU), f32 accumulation, f32 elementwise on the VPU.
    x = x_ref[...].astype(jnp.bfloat16)

    h1 = jnp.dot(x, w1_ref[...], preferred_element_type=jnp.float32) + b1_ref[...]
    h1 = jnp.maximum(h1, 0.0).astype(jnp.bfloat16)   # ReLU (Dropout p=0.5 -> identity, eval)

    h2 = jnp.dot(h1, w2_ref[...], preferred_element_type=jnp.float32) + b2_ref[...]
    h2 = jnp.maximum(h2, 0.0).astype(jnp.bfloat16)   # ReLU (Dropout p=0.3 -> identity, eval)

    # Transposed last layer: (OUT_ROWS, H2) x (TB, H2)^T -> (OUT_ROWS, TB).
    # Lane axis is the batch -> lane-dense, unmasked store with ~16x less writeback than
    # a (TB, 128)-padded layout.
    out = lax.dot_general(
        w3t_ref[...], h2, (((1,), (1,)), ((), ())),
        preferred_element_type=jnp.float32,
    )
    o_ref[...] = (out + b3t_ref[...]).astype(o_ref.dtype)


def _round_up(n, m):
    return ((n + m - 1) // m) * m


def _choose_tb(B, tb):
    """Batch tile: single step for small B; big (>=128-aligned) tiles with >=2 steps otherwise."""
    B8 = _round_up(B, 8)
    if B8 <= 256:
        return B8                                   # one grid step, block == full batch dim
    half = _round_up((B8 + 1) // 2, 128)            # guarantee >= 2 grid steps (v7x megacore)
    return max(128, min(tb, half))


def prepare_params(params):
    """One-time weight prep (hoisted out of the per-call jitted forward).

    Casts hidden-layer weights to bf16 and builds the transposed / sublane-padded final
    layer: w3t (OUT_ROWS, 256) bf16, b3t (OUT_ROWS, 1) f32 with rows >= 2 zeroed.
    """
    w1, b1 = params["w1"], params["b1"]
    w2, b2 = params["w2"], params["b2"]
    w3, b3 = params["w3"], params["b3"]
    H2, OUT = w3.shape

    w3t = jnp.zeros((OUT_ROWS, H2), jnp.bfloat16).at[:OUT, :].set(w3.T.astype(jnp.bfloat16))
    b3t = jnp.zeros((OUT_ROWS, 1), jnp.float32).at[:OUT, :].set(b3.reshape(OUT, 1))

    return {
        "w1": w1.astype(jnp.bfloat16), "b1": b1.astype(jnp.float32),
        "w2": w2.astype(jnp.bfloat16), "b2": b2.astype(jnp.float32),
        "w3t": w3t, "b3t": b3t,
        "out_dim": OUT,
    }


@functools.partial(jax.jit, static_argnames=("out_dim", "tb"))
def _forward(x, w1, b1, w2, b2, w3t, b3t, *, out_dim, tb):
    B, D = x.shape
    H1 = w1.shape[1]
    H2 = w2.shape[1]

    TB = _choose_tb(B, tb)
    B_pad = _round_up(B, TB)
    if B_pad != B:
        x = jnp.pad(x, ((0, B_pad - B), (0, 0)))

    grid = (pl.cdiv(B_pad, TB),)

    # Weights/biases stay resident across grid steps (constant block index).
    resident = lambda shape: pl.BlockSpec(shape, lambda i: (0, 0))

    # Right-sized VMEM budget: double-buffered x / out tiles, resident bf16 weights
    # (2 buffers worst case), biases, activation scratch. 48 MiB cap is safe on all
    # generations (v7x: 64 MiB physical) and no longer starves v5e/v6e at large TB.
    vmem_bytes = (
        2 * TB * D * 4                                # x double buffer (f32)
        + 2 * OUT_ROWS * TB * 4                       # out double buffer (f32)
        + 2 * 2 * (D * H1 + H1 * H2 + OUT_ROWS * H2)  # bf16 weights, x2 buffers
        + 2 * 4 * (H1 + H2 + OUT_ROWS)                # biases (f32)
        + TB * (H1 + H2) * (4 + 2)                    # h1/h2 f32 + bf16 scratch
    )
    vmem_limit = int(min(max(2 * vmem_bytes, 16 << 20), 48 << 20))

    out_t = pl.pallas_call(
        _mlp_kernel,
        out_shape=jax.ShapeDtypeStruct((OUT_ROWS, B_pad), jnp.float32),
        grid=grid,
        in_specs=[
            pl.BlockSpec((TB, D), lambda i: (i, 0)),   # x: tiled over batch
            resident((D, H1)),                          # w1 (bf16)
            resident((1, H1)),                          # b1
            resident((H1, H2)),                         # w2 (bf16)
            resident((1, H2)),                          # b2
            resident((OUT_ROWS, H2)),                   # w3^T, sublane-padded (bf16)
            resident((OUT_ROWS, 1)),                    # b3^T, sublane-padded
        ],
        out_specs=pl.BlockSpec((OUT_ROWS, TB), lambda i: (0, i)),
        compiler_params=pltpu.CompilerParams(
            dimension_semantics=("parallel",),          # batch tiles -> both v7x TensorCores
            vmem_limit_bytes=vmem_limit,
        ),
    )(x, w1, b1, w2, b2, w3t, b3t)

    # (OUT_ROWS, B_pad) -> (B, out_dim); padded rows/lanes hold zeros / garbage and are dropped.
    return out_t[:out_dim, :B].T


def theta_intensity_regressor(x, prepared_params, *, tb=1024):
    """Forward pass of ThetaIntensityRegressor. x: (B, D) f32 -> (B, 2) f32."""
    p = prepared_params
    return _forward(x, p["w1"], p["b1"], p["w2"], p["b2"], p["w3t"], p["b3t"],
                    out_dim=p["out_dim"], tb=tb)


def init_params(input_dim, key):
    """Deterministic synthetic parameter init (shapes match the PyTorch module)."""
    k1, k2, k3, k4, k5, k6 = jax.random.split(key, 6)

    def linear(kw, kb, fan_in, fan_out):
        bound = 1.0 / jnp.sqrt(jnp.float32(fan_in))
        w = jax.random.uniform(kw, (fan_in, fan_out), jnp.float32, -bound, bound)
        b = jax.random.uniform(kb, (1, fan_out), jnp.float32, -bound, bound)
        return w, b

    w1, b1 = linear(k1, k2, input_dim, 512)
    w2, b2 = linear(k3, k4, 512, 256)
    w3, b3 = linear(k5, k6, 256, 2)
    return {"w1": w1, "b1": b1, "w2": w2, "b2": b2, "w3": w3, "b3": b3}


def reference(x, p):
    h1 = jnp.maximum(x @ p["w1"] + p["b1"], 0.0)
    h2 = jnp.maximum(h1 @ p["w2"] + p["b2"], 0.0)
    return h2 @ p["w3"] + p["b3"]


if __name__ == "__main__":
    key = jax.random.PRNGKey(0)
    k_x, k_p = jax.random.split(key)

    B, INPUT_DIM = 2, 32
    x = jax.random.normal(k_x, (B, INPUT_DIM), dtype=jnp.float32)
    params = init_params(INPUT_DIM, k_p)
    prepared = prepare_params(params)   # one-time weight cast / transpose / pad

    out = theta_intensity_regressor(x, prepared)
    out = jax.block_until_ready(out)

    ref = reference(x, params)
    assert out.shape == (B, 2), out.shape
    # bf16 matmul operands with f32 accumulation -> slightly looser tolerance than pure f32.
    assert jnp.allclose(out, ref, atol=2e-2, rtol=2e-2), (out, ref)

    print("KERNEL_OK")
</pallas_src>

<mosaic_0001>
module attributes {stable_mosaic.version = 11 : i64} {
  func.func @_mlp_kernel(%arg0: i32, %arg1: memref<8x32xf32, #tpu.memory_space<vmem>>, %arg2: memref<32x512xbf16, #tpu.memory_space<vmem>>, %arg3: memref<1x512xf32, #tpu.memory_space<vmem>>, %arg4: memref<512x256xbf16, #tpu.memory_space<vmem>>, %arg5: memref<1x256xf32, #tpu.memory_space<vmem>>, %arg6: memref<8x256xbf16, #tpu.memory_space<vmem>>, %arg7: memref<8x1xf32, #tpu.memory_space<vmem>>, %arg8: memref<8x8xf32, #tpu.memory_space<vmem>>) attributes {dimension_semantics = [#tpu.dimension_semantics<parallel>], iteration_bounds = array<i64: 1>, scalar_prefetch = 0 : i64, scratch_operands = 0 : i64, tpu.core_type = #tpu.core_type<tc>, window_params = [{transform_indices = @transform_0, window_bounds = array<i64: 8, 32>}, {pipeline_mode = #tpu.pipeline_mode<synchronous>, transform_indices = @transform_1, window_bounds = array<i64: 32, 512>}, {pipeline_mode = #tpu.pipeline_mode<synchronous>, transform_indices = @transform_2, window_bounds = array<i64: 1, 512>}, {pipeline_mode = #tpu.pipeline_mode<synchronous>, transform_indices = @transform_3, window_bounds = array<i64: 512, 256>}, {pipeline_mode = #tpu.pipeline_mode<synchronous>, transform_indices = @transform_4, window_bounds = array<i64: 1, 256>}, {pipeline_mode = #tpu.pipeline_mode<synchronous>, transform_indices = @transform_5, window_bounds = array<i64: 8, 256>}, {pipeline_mode = #tpu.pipeline_mode<synchronous>, transform_indices = @transform_6, window_bounds = array<i64: 8, 1>}, {transform_indices = @transform_7, window_bounds = array<i64: 8, 8>}]} {
    %c0 = arith.constant 0 : index
    %c0_0 = arith.constant 0 : index
    %0 = vector.load %arg1[%c0, %c0_0] : memref<8x32xf32, #tpu.memory_space<vmem>>, vector<8x32xf32>
    %1 = arith.truncf %0 : vector<8x32xf32> to vector<8x32xbf16>
    %c0_1 = arith.constant 0 : index
    %c0_2 = arith.constant 0 : index
    %2 = vector.load %arg2[%c0_1, %c0_2] : memref<32x512xbf16, #tpu.memory_space<vmem>>, vector<32x512xbf16>
    %cst = arith.constant dense<0.000000e+00> : vector<8x512xf32>
    %3 = tpu.matmul %1, %2, %cst {dimension_numbers = #tpu.dot_dimension_numbers<[1], [0], [0], [1], [0, 0, 1, 1], [], []>} : vector<8x32xbf16>, vector<32x512xbf16>, vector<8x512xf32> -> vector<8x512xf32>
    %c0_3 = arith.constant 0 : index
    %c0_4 = arith.constant 0 : index
    %4 = vector.load %arg3[%c0_3, %c0_4] : memref<1x512xf32, #tpu.memory_space<vmem>>, vector<1x512xf32>
    %5 = vector.broadcast %4 : vector<1x512xf32> to vector<8x512xf32>
    %6 = arith.addf %3, %5 : vector<8x512xf32>
    %cst_5 = arith.constant 0.000000e+00 : f32
    %7 = vector.broadcast %cst_5 : f32 to vector<8x512xf32>
    %8 = arith.maximumf %6, %7 : vector<8x512xf32>
    %9 = arith.truncf %8 : vector<8x512xf32> to vector<8x512xbf16>
    %c0_6 = arith.constant 0 : index
    %c0_7 = arith.constant 0 : index
    %10 = vector.load %arg4[%c0_6, %c0_7] : memref<512x256xbf16, #tpu.memory_space<vmem>>, vector<512x256xbf16>
    %cst_8 = arith.constant dense<0.000000e+00> : vector<8x256xf32>
    %11 = tpu.matmul %9, %10, %cst_8 {dimension_numbers = #tpu.dot_dimension_numbers<[1], [0], [0], [1], [0, 0, 1, 1], [], []>} : vector<8x512xbf16>, vector<512x256xbf16>, vector<8x256xf32> -> vector<8x256xf32>
    %c0_9 = arith.constant 0 : index
    %c0_10 = arith.constant 0 : index
    %12 = vector.load %arg5[%c0_9, %c0_10] : memref<1x256xf32, #tpu.memory_space<vmem>>, vector<1x256xf32>
    %13 = vector.broadcast %12 : vector<1x256xf32> to vector<8x256xf32>
    %14 = arith.addf %11, %13 : vector<8x256xf32>
    %cst_11 = arith.constant 0.000000e+00 : f32
    %15 = vector.broadcast %cst_11 : f32 to vector<8x256xf32>
    %16 = arith.maximumf %14, %15 : vector<8x256xf32>
    %17 = arith.truncf %16 : vector<8x256xf32> to vector<8x256xbf16>
    %c0_12 = arith.constant 0 : index
    %c0_13 = arith.constant 0 : index
    %18 = vector.load %arg6[%c0_12, %c0_13] : memref<8x256xbf16, #tpu.memory_space<vmem>>, vector<8x256xbf16>
    %cst_14 = arith.constant dense<0.000000e+00> : vector<8x8xf32>
    %19 = tpu.matmul %18, %17, %cst_14 {dimension_numbers = #tpu.dot_dimension_numbers<[1], [1], [0], [0], [0, 0, 1, 0], [], []>} : vector<8x256xbf16>, vector<8x256xbf16>, vector<8x8xf32> -> vector<8x8xf32>
    %c0_15 = arith.constant 0 : index
    %c0_16 = arith.constant 0 : index
    %20 = vector.load %arg7[%c0_15, %c0_16] : memref<8x1xf32, #tpu.memory_space<vmem>>, vector<8x1xf32>
    %21 = vector.broadcast %20 : vector<8x1xf32> to vector<8x8xf32>
    %22 = arith.addf %19, %21 : vector<8x8xf32>
    %c0_17 = arith.constant 0 : index
    %c0_18 = arith.constant 0 : index
    %23 = vector.load %arg8[%c0_17, %c0_18] : memref<8x8xf32, #tpu.memory_space<vmem>>, vector<8x8xf32>
    tpu.vector_store %arg8[%c0_17, %c0_18], %22 {strides = array<i32>} : memref<8x8xf32, #tpu.memory_space<vmem>>, vector<8x8xf32>,
    return
  }
  func.func @transform_0(%arg0: i32) -> (i32, i32) {
    %c0_i32 = arith.constant 0 : i32
    %c0_i32_0 = arith.constant 0 : i32
    return %arg0, %c0_i32 : i32, i32
  }
  func.func @transform_1(%arg0: i32) -> (i32, i32) {
    %c0_i32 = arith.constant 0 : i32
    %c0_i32_0 = arith.constant 0 : i32
    %c0_i32_1 = arith.constant 0 : i32
    return %c0_i32, %c0_i32_0 : i32, i32
  }
  func.func @transform_2(%arg0: i32) -> (i32, i32) {
    %c0_i32 = arith.constant 0 : i32
    %c0_i32_0 = arith.constant 0 : i32
    %c0_i32_1 = arith.constant 0 : i32
    return %c0_i32, %c0_i32_0 : i32, i32
  }
  func.func @transform_3(%arg0: i32) -> (i32, i32) {
    %c0_i32 = arith.constant 0 : i32
    %c0_i32_0 = arith.constant 0 : i32
    %c0_i32_1 = arith.constant 0 : i32
    return %c0_i32, %c0_i32_0 : i32, i32
  }
  func.func @transform_4(%arg0: i32) -> (i32, i32) {
    %c0_i32 = arith.constant 0 : i32
    %c0_i32_0 = arith.constant 0 : i32
    %c0_i32_1 = arith.constant 0 : i32
    return %c0_i32, %c0_i32_0 : i32, i32
  }
  func.func @transform_5(%arg0: i32) -> (i32, i32) {
    %c0_i32 = arith.constant 0 : i32
    %c0_i32_0 = arith.constant 0 : i32
    %c0_i32_1 = arith.constant 0 : i32
    return %c0_i32, %c0_i32_0 : i32, i32
  }
  func.func @transform_6(%arg0: i32) -> (i32, i32) {
    %c0_i32 = arith.constant 0 : i32
    %c0_i32_0 = arith.constant 0 : i32
    %c0_i32_1 = arith.constant 0 : i32
    return %c0_i32, %c0_i32_0 : i32, i32
  }
  func.func @transform_7(%arg0: i32) -> (i32, i32) {
    %c0_i32 = arith.constant 0 : i32
    %c0_i32_0 = arith.constant 0 : i32
    return %c0_i32, %arg0 : i32, i32
  }
}

</mosaic_0001>

<bundles_post_ra>
// kernel: _forward.1
= control target key start
LH: loop header
LB: loop body
LE: loop exit
PB: predicated region body
PF: predicated region fallthrough
CT: control target
= control target key end

     0   :  { %12 = vsyncpa [#allocation3], 0  ;;  %s1074_s0 = inlined_call_operand.vmem [shape: f32[8,32], index: 0, kind: input, shape index: {}]   ;;  %s1075_s1 = inlined_call_operand.hbm [shape: bf16[32,512], index: 1, kind: input, shape index: {}]   ;;  %s1076_s2 = inlined_call_operand.vmem [shape: f32[1,512], index: 2, kind: input, shape index: {}]   ;;  %s1077_s3 = inlined_call_operand.hbm [shape: bf16[512,256], index: 3, kind: input, shape index: {}]   ;;  %s1078_s4 = inlined_call_operand.vmem [shape: f32[1,256], index: 4, kind: input, shape index: {}]   ;;  %s1079_s5 = inlined_call_operand.vmem [shape: bf16[8,256], index: 5, kind: input, shape index: {}]   ;;  %s1080_s6 = inlined_call_operand.vmem [shape: f32[8,1], index: 6, kind: input, shape index: {}]   ;;  %s1081_s7 = inlined_call_operand.vmem [shape: f32[8,8], index: 7, kind: output, shape index: {}]  }
   0x1   :  { %13 = vsyncpa [#allocation5], 0  ;;  %s1003_s24 = smov [#allocation2]  }
   0x2   :  { %s21_s25 = sshll.u32 %s1003_s24, 4  ;;  %s22_s25 = int_to_ptr.vmem [resolvable:$true] %s21_s25 }
   0x3   :  { %s967_s26 = scalar_lea.vmem %s22_s25, 1024  ;;  %p972_p1 = scmp.lt.s32.totalorder %s22_s25, %s22_s25 }
   0x4   :  { %p968_p0 = scmp.ne.s32.totalorder %s22_s25, %s967_s26  ;;  %p973_p2 = scmp.lt.s32.totalorder %s967_s26, %s967_s26 }
   0x6   :  { %p974_p3 = por %p973_p2, %p972_p1 }
   0x8   :  { %p975_p4 = pnand %p974_p3, %p968_p0 }
   0xa   :  { %978 = shalt.err (!%p975_p4)
}
   0xb   :  { %s1004_s27 = smov 256   ;;  %s1005_s28 = smov 16  }
   0xc   :  { %27 = dma.hbm_to_vmem [thread:$0]  %s1075_s1, 1024, %s22_s25, [#allocation3], %s1004_s27, %s1004_s27, %s1005_s28  }
   0xd   :  { %s1006_s8 = smov [#allocation4]  }
   0xe   :  { %s35_s9 = sshll.u32 %s1006_s8, 4  ;;  %s36_s9 = int_to_ptr.vmem [resolvable:$true] %s35_s9 }
   0xf   :  { %s987_s10 = scalar_lea.vmem %s36_s9, 8192  ;;  %p992_p6 = scmp.lt.s32.totalorder %s36_s9, %s36_s9 }
  0x10   :  { %p988_p5 = scmp.ne.s32.totalorder %s36_s9, %s987_s10  ;;  %p993_p7 = scmp.lt.s32.totalorder %s987_s10, %s987_s10 }
  0x12   :  { %p994_p8 = por %p993_p7, %p992_p6 }
  0x14   :  { %p995_p9 = pnand %p994_p8, %p988_p5 }
  0x16   :  { %998 = shalt.err (!%p995_p9)
}
  0x17   :  { %s1007_s11 = smov 128   ;;  %s1008_s12 = smov 8  }
  0x18   :  { %41 = dma.hbm_to_vmem [thread:$0]  %s1077_s3, 8192, %s36_s9, [#allocation5], %s1007_s11, %s1007_s11, %s1008_s12  }
  0x19   :  { %999 = dma.done.wait [#allocation3], 1024  }
  0x1a   :  { %1000 = vsyncadd [#allocation3], 4294966272 }
  0x1b   :  { %1001 = dma.done.wait [#allocation5], 8192  }
  0x1c   :  { %1002 = vsyncadd [#allocation5], 4294959104  ;;  %v1009_v0 = vmov 0   ;;  %v849_v1 = vld [vmem:[#allocation2 + $0x24] ss:$16 sps:$4 sm:$0xff]   ;;  %vm127_vm0 = vcmask 261120  }
  0x1d   :  { %163 = vmatprep.mubr.bf16.mxu0 %v1009_v0  ;;  %204 = vmatprep.mubr.bf16.mxu1 %v1009_v0  ;;  %v851_v2 = vld [vmem:[#allocation2 + $0x2c] ss:$16 sps:$4 sm:$0xff]   ;;  %v853_v3 = vld [vmem:[#allocation2 + $0x20] ss:$16 sps:$4 sm:$0xff]   ;;  %v854_v4 = vld [vmem:[#allocation2 + $0x28] ss:$16 sps:$4 sm:$0xff]  }
  0x1e   :  { %848 = vset.pattern.permute.xlu0 %v1009_v0  ;;  %143 = vmatprep.subr.bf16.mxu0 %v849_v1  ;;  %v855_v5 = vld [vmem:[#allocation2 + $0x4] ss:$16 sps:$4 sm:$0xff]   ;;  %v857_v6 = vld [vmem:[#allocation2 + $0xc] ss:$16 sps:$4 sm:$0xff]   ;;  %v859_v7 = vld [vmem:[#allocation2] ss:$16 sps:$4 sm:$0xff]  }
  0x1f   :  { %184 = vmatprep.subr.bf16.mxu1 %v851_v2  ;;  %144 = vmatpush1.bf16.msra.mxu0 %v853_v3  ;;  %v860_v8 = vld [vmem:[#allocation2 + $0x8] ss:$16 sps:$4 sm:$0xff]   ;;  %v55_v9 = vld [vmem:[%s1074_s0] sm:$0xff]  ;;  %v863_v11 = vld [vmem:[#allocation4 + $0x74] ss:$8 sps:$4 sm:$0xff]   ;;  %vm757_vm1 = vcmask 64512  }
  0x20   :  { %185 = vmatpush1.bf16.msra.mxu1 %v854_v4  ;;  %145 = vmatprep.subr.bf16.mxu0 %v855_v5  ;;  %v861_v10 = vld [vmem:[#allocation4 + $0x70] ss:$8 sps:$4 sm:$0xff]   ;;  %v56_v12 = vpack.c.bf16 %v55_v9, %v55_v9  ;;  %v866_v14 = vld [vmem:[#allocation4 + $0x174] ss:$8 sps:$4 sm:$0xff]   ;;  %v869_v15 = vld [vmem:[#allocation4 + $0x64] ss:$8 sps:$4 sm:$0xff]  }
  0x21   :  { %186 = vmatprep.subr.bf16.mxu1 %v857_v6  ;;  %v864_v13 = vld [vmem:[#allocation4 + $0x170] ss:$8 sps:$4 sm:$0xff]   ;;  %v872_v16 = vld [vmem:[#allocation4 + $0x164] ss:$8 sps:$4 sm:$0xff]   ;;  %v867_v17 = vld [vmem:[#allocation4 + $0x60] ss:$8 sps:$4 sm:$0xff]  }
  0x22   :  { %v870_v18 = vld [vmem:[#allocation4 + $0x160] ss:$8 sps:$4 sm:$0xff]   ;;  %v875_v19 = vld [vmem:[#allocation4 + $0x54] ss:$8 sps:$4 sm:$0xff]   ;;  %v873_v21 = vld [vmem:[#allocation4 + $0x50] ss:$8 sps:$4 sm:$0xff]  }
  0x23   :  { %146 = vmatpush1.bf16.msra.mxu0 %v859_v7  ;;  %v878_v20 = vld [vmem:[#allocation4 + $0x154] ss:$8 sps:$4 sm:$0xff]   ;;  %v876_v22 = vld [vmem:[#allocation4 + $0x150] ss:$8 sps:$4 sm:$0xff]   ;;  %v881_v23 = vld [vmem:[#allocation4 + $0x44] ss:$8 sps:$4 sm:$0xff]  }
  0x24   :  { %187 = vmatpush1.bf16.msra.mxu1 %v860_v8  ;;  %617 = vmatprep.subr.bf16.mxu0 %v863_v11  ;;  %v884_v24 = vld [vmem:[#allocation4 + $0x144] ss:$8 sps:$4 sm:$0xff]   ;;  %v879_v25 = vld [vmem:[#allocation4 + $0x40] ss:$8 sps:$4 sm:$0xff]   ;;  %v887_v27 = vld [vmem:[#allocation4 + $0x34] ss:$8 sps:$4 sm:$0xff]   ;;  %v67_v11 = vlaneseq }
  0x25   :  { %658 = vmatprep.subr.bf16.mxu1 %v866_v14  ;;  %v882_v26 = vld [vmem:[#allocation4 + $0x140] ss:$8 sps:$4 sm:$0xff]   ;;  %v890_v28 = vld [vmem:[#allocation4 + $0x134] ss:$8 sps:$4 sm:$0xff]   ;;  %v885_v29 = vld [vmem:[#allocation4 + $0x30] ss:$8 sps:$4 sm:$0xff]  }
  0x26   :  { %773 = vmatmul.mubr.msk.bf16.vlgmr.msra.gmra.mxu0 %vm127_vm0, %v56_v12  ;;  %v888_v30 = vld [vmem:[#allocation4 + $0x130] ss:$8 sps:$4 sm:$0xff]   ;;  %v893_v31 = vld [vmem:[#allocation4 + $0x24] ss:$8 sps:$4 sm:$0xff]   ;;  %v891_v33 = vld [vmem:[#allocation4 + $0x20] ss:$8 sps:$4 sm:$0xff]  }
  0x27   :  { %774 = vmatmul.mubr.msk.bf16.vlgmr.msra.gmra.mxu1 %vm127_vm0, %v56_v12  ;;  %618 = vmatpush1.bf16.msra.mxu0 %v861_v10  ;;  %v896_v32 = vld [vmem:[#allocation4 + $0x124] ss:$8 sps:$4 sm:$0xff]   ;;  %v894_v34 = vld [vmem:[#allocation4 + $0x120] ss:$8 sps:$4 sm:$0xff]   ;;  %v899_v35 = vld [vmem:[#allocation4 + $0x14] ss:$8 sps:$4 sm:$0xff]  }
  0x28   :  { %659 = vmatpush1.bf16.msra.mxu1 %v864_v13  ;;  %619 = vmatprep.subr.bf16.mxu0 %v869_v15  ;;  %v902_v36 = vld [vmem:[#allocation4 + $0x114] ss:$8 sps:$4 sm:$0xff]   ;;  %v897_v37 = vld [vmem:[#allocation4 + $0x10] ss:$8 sps:$4 sm:$0xff]   ;;  %v905_v39 = vld [vmem:[#allocation4 + $0x4] ss:$8 sps:$4 sm:$0xff]  }
  0x29   :  { %660 = vmatprep.subr.bf16.mxu1 %v872_v16  ;;  %v900_v38 = vld [vmem:[#allocation4 + $0x110] ss:$8 sps:$4 sm:$0xff]   ;;  %v908_v40 = vld [vmem:[#allocation4 + $0x104] ss:$8 sps:$4 sm:$0xff]   ;;  %v903_v41 = vld [vmem:[#allocation4] ss:$8 sps:$4 sm:$0xff]  }
  0x2a   :  { %v906_v42 = vld [vmem:[#allocation4 + $0x100] ss:$8 sps:$4 sm:$0xff]   ;;  %v911_v43 = vld [vmem:[#allocation4 + $0xf4] ss:$8 sps:$4 sm:$0xff]   ;;  %v909_v45 = vld [vmem:[#allocation4 + $0xf0] ss:$8 sps:$4 sm:$0xff]  }
  0x2b   :  { %620 = vmatpush1.bf16.msra.mxu0 %v867_v17  ;;  %v914_v44 = vld [vmem:[#allocation4 + $0x1f4] ss:$8 sps:$4 sm:$0xff]   ;;  %v912_v46 = vld [vmem:[#allocation4 + $0x1f0] ss:$8 sps:$4 sm:$0xff]   ;;  %v917_v47 = vld [vmem:[#allocation4 + $0xe4] ss:$8 sps:$4 sm:$0xff]  }
  0x2c   :  { %661 = vmatpush1.bf16.msra.mxu1 %v870_v18  ;;  %621 = vmatprep.subr.bf16.mxu0 %v875_v19  ;;  %v920_v48 = vld [vmem:[#allocation4 + $0x1e4] ss:$8 sps:$4 sm:$0xff]   ;;  %v915_v49 = vld [vmem:[#allocation4 + $0xe0] ss:$8 sps:$4 sm:$0xff]   ;;  %v923_v51 = vld [vmem:[#allocation4 + $0xd4] ss:$8 sps:$4 sm:$0xff]  }
  0x2d   :  { %662 = vmatprep.subr.bf16.mxu1 %v878_v20  ;;  %v918_v50 = vld [vmem:[#allocation4 + $0x1e0] ss:$8 sps:$4 sm:$0xff]   ;;  %v926_v52 = vld [vmem:[#allocation4 + $0x1d4] ss:$8 sps:$4 sm:$0xff]   ;;  %v921_v53 = vld [vmem:[#allocation4 + $0xd0] ss:$8 sps:$4 sm:$0xff]  }
  0x2e   :  { %v924_v54 = vld [vmem:[#allocation4 + $0x1d0] ss:$8 sps:$4 sm:$0xff]   ;;  %v929_v55 = vld [vmem:[#allocation4 + $0xc4] ss:$8 sps:$4 sm:$0xff]   ;;  %v927_v57 = vld [vmem:[#allocation4 + $0xc0] ss:$8 sps:$4 sm:$0xff]  }
  0x2f   :  { %622 = vmatpush1.bf16.msra.mxu0 %v873_v21  ;;  %v932_v56 = vld [vmem:[#allocation4 + $0x1c4] ss:$8 sps:$4 sm:$0xff]   ;;  %v930_v58 = vld [vmem:[#allocation4 + $0x1c0] ss:$8 sps:$4 sm:$0xff]   ;;  %v935_v59 = vld [vmem:[#allocation4 + $0xb4] ss:$8 sps:$4 sm:$0xff]  }
  0x30   :  { %663 = vmatpush1.bf16.msra.mxu1 %v876_v22  ;;  %623 = vmatprep.subr.bf16.mxu0 %v881_v23  ;;  %v938_v60 = vld [vmem:[#allocation4 + $0x1b4] ss:$8 sps:$4 sm:$0xff]   ;;  %v933_v61 = vld [vmem:[#allocation4 + $0xb0] ss:$8 sps:$4 sm:$0xff]   ;;  %v941_v63 = vld [vmem:[#allocation4 + $0xa4] ss:$8 sps:$4 sm:$0xff]  }
  0x31   :  { %664 = vmatprep.subr.bf16.mxu1 %v884_v24  ;;  %v936_v62 = vld [vmem:[#allocation4 + $0x1b0] ss:$8 sps:$4 sm:$0xff]   ;;  %v944_v0 = vld [vmem:[#allocation4 + $0x1a4] ss:$8 sps:$4 sm:$0xff]   ;;  %v939_v1 = vld [vmem:[#allocation4 + $0xa0] ss:$8 sps:$4 sm:$0xff]  }
  0x32   :  { %v942_v2 = vld [vmem:[#allocation4 + $0x1a0] ss:$8 sps:$4 sm:$0xff]   ;;  %v947_v3 = vld [vmem:[#allocation4 + $0x94] ss:$8 sps:$4 sm:$0xff]   ;;  %v945_v5 = vld [vmem:[#allocation4 + $0x90] ss:$8 sps:$4 sm:$0xff]  }
  0x33   :  { %624 = vmatpush1.bf16.msra.mxu0 %v879_v25  ;;  %v950_v4 = vld [vmem:[#allocation4 + $0x194] ss:$8 sps:$4 sm:$0xff]   ;;  %v948_v6 = vld [vmem:[#allocation4 + $0x190] ss:$8 sps:$4 sm:$0xff]   ;;  %v953_v7 = vld [vmem:[#allocation4 + $0x84] ss:$8 sps:$4 sm:$0xff]  }
  0x34   :  { %665 = vmatpush1.bf16.msra.mxu1 %v882_v26  ;;  %625 = vmatprep.subr.bf16.mxu0 %v887_v27  ;;  %v956_v8 = vld [vmem:[#allocation4 + $0x184] ss:$8 sps:$4 sm:$0xff]   ;;  %v951_v9 = vld [vmem:[#allocation4 + $0x80] ss:$8 sps:$4 sm:$0xff]   ;;  %v68_v12 = vshrl.u32 %v67_v11, 7 }
  0x35   :  { %666 = vmatprep.subr.bf16.mxu1 %v890_v28  ;;  %v954_v10 = vld [vmem:[#allocation4 + $0x180] ss:$8 sps:$4 sm:$0xff]  }
  0x36   :  { %v69_v13 = vsub.s32 0, %v68_v12  ;;  %v77_v14 = vsub.s32 2, %v68_v12  ;;  %v65_v15 = vld [vmem:[%s1076_s2] sm:$0xf]  ;;  %v73_v16 = vsub.s32 1, %v68_v12  ;;  %v81_v17 = vsub.s32 3, %v68_v12 }
  0x37   :  { %626 = vmatpush1.bf16.msra.mxu0 %v885_v29 }
  0x38   :  { %667 = vmatpush1.bf16.msra.mxu1 %v888_v30  ;;  %627 = vmatprep.subr.bf16.mxu0 %v893_v31  ;;  %v70_v18 = vrot.slane %v65_v15, %v69_v13  ;;  %v78_v19 = vrot.slane %v65_v15, %v77_v14  ;;  %v74_v20 = vrot.slane %v65_v15, %v73_v16 }
  0x39   :  { %668 = vmatprep.subr.bf16.mxu1 %v896_v32  ;;  %v82_v21 = vrot.slane %v65_v15, %v81_v17 }
  0x3b   :  { %628 = vmatpush1.bf16.msra.mxu0 %v891_v33 }
  0x3c   :  { %669 = vmatpush1.bf16.msra.mxu1 %v894_v34  ;;  %629 = vmatprep.subr.bf16.mxu0 %v899_v35 }
  0x3d   :  { %670 = vmatprep.subr.bf16.mxu1 %v902_v36 }
  0x3f   :  { %630 = vmatpush1.bf16.msra.mxu0 %v897_v37 }
  0x40   :  { %671 = vmatpush1.bf16.msra.mxu1 %v900_v38  ;;  %631 = vmatprep.subr.bf16.mxu0 %v905_v39 }
  0x41   :  { %672 = vmatprep.subr.bf16.mxu1 %v908_v40 }
  0x43   :  { %632 = vmatpush1.bf16.msra.mxu0 %v903_v41 }
  0x44   :  { %673 = vmatpush1.bf16.msra.mxu1 %v906_v42  ;;  %633 = vmatprep.subr.bf16.mxu0 %v911_v43  ;;  %v703_v42 = vld [vmem:[%s1079_s5] sm:$0xff] }
  0x45   :  { %674 = vmatprep.subr.bf16.mxu1 %v914_v44  ;;  %v840_v43 = vcombine.high %v703_v42, %v703_v42  ;;  %v704_v44 = vld [vmem:[%s1080_s6] sm:$0xff] }
  0x46   :  { %707 = vperm.xlu0 %848, %v704_v44  }
  0x47   :  { %634 = vmatpush2.bf16.msra.mxu0 %v909_v45  ;;  %v285_v45 = vld [vmem:[%s1078_s4] sm:$0x3] }
  0x48   :  { %675 = vmatpush2.bf16.msra.mxu1 %v912_v46  ;;  %635 = vmatprep.subr.bf16.mxu0 %v917_v47  ;;  %v290_v46 = vrot.slane %v285_v45, %v69_v13  ;;  %v294_v47 = vrot.slane %v285_v45, %v73_v16 }
  0x49   :  { %676 = vmatprep.subr.bf16.mxu1 %v920_v48 }
  0x4b   :  { %636 = vmatpush2.bf16.msra.mxu0 %v915_v49 }
  0x4c   :  { %677 = vmatpush2.bf16.msra.mxu1 %v918_v50  ;;  %637 = vmatprep.subr.bf16.mxu0 %v923_v51 }
  0x4d   :  { %678 = vmatprep.subr.bf16.mxu1 %v926_v52 }
  0x4f   :  { %638 = vmatpush2.bf16.msra.mxu0 %v921_v53 }
  0x50   :  { %679 = vmatpush2.bf16.msra.mxu1 %v924_v54  ;;  %639 = vmatprep.subr.bf16.mxu0 %v929_v55 }
  0x51   :  { %680 = vmatprep.subr.bf16.mxu1 %v932_v56 }
  0x53   :  { %640 = vmatpush2.bf16.msra.mxu0 %v927_v57 }
  0x54   :  { %681 = vmatpush2.bf16.msra.mxu1 %v930_v58  ;;  %641 = vmatprep.subr.bf16.mxu0 %v935_v59 }
  0x55   :  { %682 = vmatprep.subr.bf16.mxu1 %v938_v60 }
  0x57   :  { %642 = vmatpush2.bf16.msra.mxu0 %v933_v61 }
  0x58   :  { %683 = vmatpush2.bf16.msra.mxu1 %v936_v62  ;;  %643 = vmatprep.subr.bf16.mxu0 %v941_v63 }
  0x59   :  { %684 = vmatprep.subr.bf16.mxu1 %v944_v0  ;;  %v839_v0 = vcombine.low %v703_v42, %v703_v42 }
  0x5b   :  { %644 = vmatpush2.bf16.msra.mxu0 %v939_v1 }
  0x5c   :  { %685 = vmatpush2.bf16.msra.mxu1 %v942_v2  ;;  %645 = vmatprep.subr.bf16.mxu0 %v947_v3 }
  0x5d   :  { %686 = vmatprep.subr.bf16.mxu1 %v950_v4 }
  0x5f   :  { %646 = vmatpush2.bf16.msra.mxu0 %v945_v5 }
  0x60   :  { %687 = vmatpush2.bf16.msra.mxu1 %v948_v6  ;;  %647 = vmatprep.subr.bf16.mxu0 %v953_v7 }
  0x61   :  { %688 = vmatprep.subr.bf16.mxu1 %v956_v8 }
  0x63   :  { %648 = vmatpush2.bf16.msra.mxu0 %v951_v9 }
  0x64   :  { %689 = vmatpush2.bf16.msra.mxu1 %v954_v10 }
  0xc1   :  { %v708_v1 = vpop.permute.xlu0 %707 }
  0xe6   :  { %v165_v22 = vpop.f32.mrf.mxu0 }
  0xe7   :  { %v206_v23 = vpop.f32.mrf.mxu1  ;;  %v166_v24 = vadd.f32 %v165_v22, %v70_v18 }
  0xe8   :  { %v207_v25 = vadd.f32 %v206_v23, %v78_v19  ;;  %v167_v26 = vpop.f32.mrf.mxu0 }
  0xe9   :  { %v208_v27 = vpop.f32.mrf.mxu1  ;;  %v168_v29 = vadd.f32 %v167_v26, %v74_v20  ;;  %v213_v31 = vmax.f32 %v166_v24, 0.0 }
  0xea   :  { %v215_v28 = vmax.f32 %v207_v25, 0.0  ;;  %v209_v30 = vadd.f32 %v208_v27, %v82_v21  ;;  %v169_v32 = vpop.f32.mrf.mxu0 }
  0xeb   :  { %v210_v33 = vpop.f32.mrf.mxu1  ;;  %v214_v34 = vmax.f32 %v168_v29, 0.0  ;;  %v217_v41 = vpack.c.bf16 %v213_v31, %v213_v31 }
  0xec   :  { %v216_v35 = vmax.f32 %v209_v30, 0.0  ;;  %v219_v36 = vpack.c.bf16 %v215_v28, %v215_v28  ;;  %v170_v37 = vpop.f32.mrf.mxu0 }
  0xed   :  { %v211_v38 = vpop.f32.mrf.mxu1  ;;  %v218_v39 = vpack.c.bf16 %v214_v34, %v214_v34 }
  0xee   :  { %v220_v40 = vpack.c.bf16 %v216_v35, %v216_v35 }
  0xef   :  { %649 = vmatprep.mubr.bf16.mxu0 %v218_v39 }
  0xf0   :  { %690 = vmatprep.mubr.bf16.mxu1 %v220_v40  ;;  %650 = vmatmul.mubr.bf16.vlgmr.msra.gmra.mxu0 %v217_v41 }
  0xf1   :  { %691 = vmatmul.mubr.bf16.vlgmr.msra.gmra.mxu1 %v219_v36  ;;  %749 = vmatprep.mubr.bf16.mxu0 %v840_v43 }
 0x1b0   :  { %v651_v48 = vpop.f32.mrf.mxu0 }
 0x1b1   :  { %v692_v49 = vpop.f32.mrf.mxu1  ;;  %v652_v50 = vadd.f32 %v651_v48, %v290_v46 }
 0x1b2   :  { %v653_v51 = vpop.f32.mrf.mxu0 }
 0x1b3   :  { %v694_v52 = vpop.f32.mrf.mxu1  ;;  %v693_v53 = vadd.f32 %v692_v49, %v652_v50  ;;  %v654_v54 = vadd.f32 %v653_v51, %v294_v47 }
 0x1b4   :  { %v655_v55 = vpop.f32.mrf.mxu0 }
 0x1b5   :  { %v696_v56 = vpop.f32.mrf.mxu1  ;;  %v695_v57 = vadd.f32 %v694_v52, %v654_v54  ;;  %v699_v58 = vmax.f32 %v693_v53, 0.0 }
 0x1b6   :  { %v656_v59 = vpop.f32.mrf.mxu0 }
 0x1b7   :  { %v697_v60 = vpop.f32.mrf.mxu1  ;;  %v700_v61 = vmax.f32 %v695_v57, 0.0  ;;  %v701_v63 = vpack.c.bf16 %v699_v58, %v699_v58 }
 0x1b9   :  { %v702_v62 = vpack.c.bf16 %v700_v61, %v700_v61 }
 0x1bb   :  { %731 = vmatprep.subr.bf16.mxu0 %v702_v62 }
 0x1bc   :  { %732 = vmatpush1.bf16.xpose.msra.mxu0 %v701_v63 }
 0x1c3   :  { %750 = vmatmul.mubr.bf16.vlgmr.msra.gmra.mxu0 %v839_v0 }
 0x283   :  { %v751_v2 = vpop.f32.mrf.mxu0 }
 0x284   :  { %v752_v3 = vadd.f32 %v751_v2, %v708_v1 }
 0x285   :  { %v753_v4 = vpop.f32.mrf.mxu0 }
 0x286   :  { %758 = vst.msk [vmem:[%s1081_s7] sm:$0xff] %vm757_vm1, %v752_v3 }
 0x287   :  { %v754_v5 = vpop.f32.mrf.mxu0 }
 0x289   :  { %v755_v6 = vpop.f32.mrf.mxu0 }
 0x28a   :  { %763 = vsyncpa [#allocation3], 1 }
 0x28b   :  { %764 = vsyncpa [#allocation5], 1 }

</bundles_post_ra>
